<compile_context>
chip_gen: v7x
topology: tpu7x:2x2x1
jax: 0.10.0
libtpu: 0.0.40
codegen_flags: <defaults>
</compile_context>

<pallas_src>
import jax
import jax.numpy as jnp
from jax import lax
from jax.experimental import pallas as pl
from jax.experimental.pallas import tpu as pltpu


def _inv_conv1x1_kernel(x_ref, w_ref, y_ref):
    # y = x @ W.T without transposing W: contract last dim of x with last dim of W.
    y_ref[...] = lax.dot_general(
        x_ref[...],
        w_ref[...],
        dimension_numbers=(((1,), (1,)), ((), ())),
        preferred_element_type=jnp.float32,
    ).astype(y_ref.dtype)


def _choose_batch_tile(b, d, x_itemsize, w_itemsize, max_tile, vmem_budget_bytes):
    """Pick a batch tile: biggest that fits the VMEM budget, multiple of 8."""
    if b <= max_tile:
        # Single block covering the whole batch (full-array dims satisfy the
        # (8,128) rule regardless of alignment).
        return b
    # Resident weight (single copy) + double-buffered x and y tiles.
    avail = vmem_budget_bytes - d * d * w_itemsize
    # 2 (x,y) * 2 (double buffer) * tb * d * itemsize  <=  avail
    tb_fit = max(avail // (4 * d * x_itemsize), 8)
    tb = min(max_tile, tb_fit, b)
    # Sublane-align the tile.
    tb = max((tb // 8) * 8, 8)
    return tb


def invertible_conv1x1_forward(x, weight, *, block_batch=1024,
                               vmem_budget_bytes=24 << 20):
    """Forward pass of Glow-style invertible 1x1 conv: y = x @ weight.T.

    x: [batch, dim], weight: [dim, dim].
    """
    b, d = x.shape
    assert weight.shape == (d, d)

    x_itemsize = jnp.dtype(x.dtype).itemsize
    w_itemsize = jnp.dtype(weight.dtype).itemsize

    tb = _choose_batch_tile(b, d, x_itemsize, w_itemsize, block_batch,
                            vmem_budget_bytes)
    padded_b = pl.cdiv(b, tb) * tb
    x_p = x if padded_b == b else jnp.pad(x, ((0, padded_b - b), (0, 0)))
    grid = (padded_b // tb,)

    cost = pl.CostEstimate(
        flops=2 * padded_b * d * d,
        transcendentals=0,
        bytes_accessed=x_itemsize * (2 * padded_b * d) + w_itemsize * d * d,
    )

    out = pl.pallas_call(
        _inv_conv1x1_kernel,
        out_shape=jax.ShapeDtypeStruct((padded_b, d), x.dtype),
        grid=grid,
        in_specs=[
            pl.BlockSpec((tb, d), lambda i: (i, 0)),   # x: new batch tile per step
            pl.BlockSpec((d, d), lambda i: (0, 0)),    # W: resident across steps
        ],
        out_specs=pl.BlockSpec((tb, d), lambda i: (i, 0)),
        compiler_params=pltpu.CompilerParams(
            dimension_semantics=("parallel",),
            vmem_limit_bytes=64 << 20,
        ),
        cost_estimate=cost,
    )(x_p, weight)

    return out if padded_b == b else out[:b]


def make_orthogonal_weight(key, dim, dtype=jnp.float32):
    """Deterministic init matching the PyTorch module: QR of a random matrix."""
    w_init = jax.random.normal(key, (dim, dim), dtype=jnp.float32)
    q, _ = jnp.linalg.qr(w_init)
    return q.astype(dtype)


if __name__ == "__main__":
    key = jax.random.PRNGKey(0)
    k_w, k_x, k_x2 = jax.random.split(key, 3)

    dim = 32
    batch = 8

    weight = make_orthogonal_weight(k_w, dim)                # [dim, dim], orthogonal
    x = jax.random.normal(k_x, (batch, dim), jnp.float32)    # [batch, dim]

    # Small-problem path: single full-array block, grid=(1,).
    y = invertible_conv1x1_forward(x, weight)
    y = jax.block_until_ready(y)
    y_ref = x @ weight.T
    assert y.shape == (batch, dim)
    assert jnp.allclose(y, y_ref, atol=1e-5, rtol=1e-5), "mismatch vs reference"

    # Exercise the tiled (multi-grid-step, weight-resident, batch-padded) path
    # with a small forced tile so the pipelined BlockSpec logic is covered too.
    batch2 = 100  # deliberately not a multiple of the tile -> exercises padding
    x2 = jax.random.normal(k_x2, (batch2, dim), jnp.float32)
    y2 = invertible_conv1x1_forward(x2, weight, block_batch=16)
    y2 = jax.block_until_ready(y2)
    y2_ref = x2 @ weight.T
    assert y2.shape == (batch2, dim)
    assert jnp.allclose(y2, y2_ref, atol=1e-5, rtol=1e-5), "mismatch vs reference (tiled)"

    # TODO(synk): inverse() and log_det() (matrix inverse / determinant) have no
    # clean Pallas equivalent; they stay in plain JAX (jnp.linalg) at the wrapper level.
    print("KERNEL_OK")
</pallas_src>

<mosaic_0001>
module attributes {stable_mosaic.version = 11 : i64} {
  func.func @_inv_conv1x1_kernel(%arg0: i32, %arg1: memref<8x32xf32, #tpu.memory_space<vmem>>, %arg2: memref<32x32xf32, #tpu.memory_space<vmem>>, %arg3: memref<8x32xf32, #tpu.memory_space<vmem>>) attributes {dimension_semantics = [#tpu.dimension_semantics<parallel>], iteration_bounds = array<i64: 1>, scalar_prefetch = 0 : i64, scratch_operands = 0 : i64, tpu.core_type = #tpu.core_type<tc>, window_params = [{transform_indices = @transform_0, window_bounds = array<i64: 8, 32>}, {pipeline_mode = #tpu.pipeline_mode<synchronous>, transform_indices = @transform_1, window_bounds = array<i64: 32, 32>}, {transform_indices = @transform_2, window_bounds = array<i64: 8, 32>}]} {
    %c0 = arith.constant 0 : index
    %c0_0 = arith.constant 0 : index
    %0 = vector.load %arg1[%c0, %c0_0] : memref<8x32xf32, #tpu.memory_space<vmem>>, vector<8x32xf32>
    %c0_1 = arith.constant 0 : index
    %c0_2 = arith.constant 0 : index
    %1 = vector.load %arg2[%c0_1, %c0_2] : memref<32x32xf32, #tpu.memory_space<vmem>>, vector<32x32xf32>
    %cst = arith.constant dense<0.000000e+00> : vector<8x32xf32>
    %2 = tpu.matmul %0, %1, %cst {dimension_numbers = #tpu.dot_dimension_numbers<[1], [1], [0], [0], [0, 0, 1, 0], [], []>} : vector<8x32xf32>, vector<32x32xf32>, vector<8x32xf32> -> vector<8x32xf32>
    %c0_3 = arith.constant 0 : index
    %c0_4 = arith.constant 0 : index
    %3 = vector.load %arg3[%c0_3, %c0_4] : memref<8x32xf32, #tpu.memory_space<vmem>>, vector<8x32xf32>
    tpu.vector_store %arg3[%c0_3, %c0_4], %2 {strides = array<i32>} : memref<8x32xf32, #tpu.memory_space<vmem>>, vector<8x32xf32>,
    return
  }
  func.func @transform_0(%arg0: i32) -> (i32, i32) {
    %c0_i32 = arith.constant 0 : i32
    %c0_i32_0 = arith.constant 0 : i32
    return %arg0, %c0_i32 : i32, i32
  }
  func.func @transform_1(%arg0: i32) -> (i32, i32) {
    %c0_i32 = arith.constant 0 : i32
    %c0_i32_0 = arith.constant 0 : i32
    %c0_i32_1 = arith.constant 0 : i32
    return %c0_i32, %c0_i32_0 : i32, i32
  }
  func.func @transform_2(%arg0: i32) -> (i32, i32) {
    %c0_i32 = arith.constant 0 : i32
    %c0_i32_0 = arith.constant 0 : i32
    return %arg0, %c0_i32 : i32, i32
  }
}

</mosaic_0001>

<bundles_post_ra>
// kernel: tpu_custom_call.1
= control target key start
LH: loop header
LB: loop body
LE: loop exit
PB: predicated region body
PF: predicated region fallthrough
CT: control target
= control target key end

     0   :  { %7 = vsyncpa [#allocation3], 0  ;;  %s325_s0 = inlined_call_operand.hbm [shape: f32[8,32], index: 0, kind: input, shape index: {}]   ;;  %s326_s1 = inlined_call_operand.hbm [shape: f32[32,32], index: 1, kind: input, shape index: {}]   ;;  %s327_s2 = inlined_call_operand.hbm [shape: f32[8,32], index: 2, kind: output, shape index: {}]  }
   0x1   :  { %8 = vsyncpa [#allocation6], 0 }
   0x2   :  { %9 = vsyncpa [#allocation4], 0  ;;  %s255_s9 = smov [#allocation2]   ;;  %s256_s11 = smov [#allocation5]  }
   0x3   :  { %s16_s10 = sshll.u32 %s255_s9, 4  ;;  %s25_s12 = sshll.u32 %s256_s11, 4  ;;  %s17_s10 = int_to_ptr.vmem [resolvable:$true] %s16_s10  ;;  %s278_s12 = int_to_ptr.vmem [resolvable:$true] %s25_s12 }
   0x4   :  { %s183_s15 = scalar_lea.hbm %s325_s0, 128 }
   0x5   :  { %p184_p0 = scmp.ne.s32.totalorder %s325_s0, %s183_s15  ;;  %p187_p1 = scmp.lt.u32.totalorder %s183_s15, %s325_s0 }
   0x7   :  { %p189_p2 = pnand %p187_p1, %p184_p0 }
   0x9   :  { %192 = shalt.err (!%p189_p2)
}
   0xa   :  { %s193_s20 = scalar_lea.vmem %s17_s10, 128  ;;  %p198_p4 = scmp.lt.s32.totalorder %s17_s10, %s17_s10 }
   0xb   :  { %p194_p3 = scmp.ne.s32.totalorder %s17_s10, %s193_s20  ;;  %p199_p5 = scmp.lt.s32.totalorder %s193_s20, %s193_s20 }
   0xd   :  { %p200_p6 = por %p199_p5, %p198_p4 }
   0xf   :  { %p201_p7 = pnand %p200_p6, %p194_p3 }
  0x11   :  { %204 = shalt.err (!%p201_p7)
}
  0x12   :  { %19 = dma.hbm_to_vmem [thread:$0]  %s325_s0, 128, %s17_s10, [#allocation3]  }
  0x13   :  { %s205_s25 = scalar_lea.hbm %s326_s1, 512 }
  0x14   :  { %p206_p8 = scmp.ne.s32.totalorder %s326_s1, %s205_s25  ;;  %p209_p9 = scmp.lt.u32.totalorder %s205_s25, %s326_s1 }
  0x16   :  { %p211_p10 = pnand %p209_p9, %p206_p8 }
  0x18   :  { %214 = shalt.err (!%p211_p10)
}
  0x19   :  { %s215_s30 = scalar_lea.vmem %s278_s12, 512  ;;  %p220_p12 = scmp.lt.s32.totalorder %s278_s12, %s278_s12 }
  0x1a   :  { %p216_p11 = scmp.ne.s32.totalorder %s278_s12, %s215_s30  ;;  %p221_p13 = scmp.lt.s32.totalorder %s215_s30, %s215_s30 }
  0x1c   :  { %p222_p0 = por %p221_p13, %p220_p12 }
  0x1e   :  { %p223_p1 = pnand %p222_p0, %p216_p11 }
  0x20   :  { %226 = shalt.err (!%p223_p1)
}
  0x21   :  { %s257_s0 = smov 128   ;;  %s258_s3 = smov 8  }
  0x22   :  { %31 = dma.hbm_to_vmem [thread:$0]  %s326_s1, 512, %s278_s12, [#allocation6], %s257_s0, %s257_s0, %s258_s3  }
  0x23   :  { %249 = dma.done.wait [#allocation3], 128  }
  0x24   :  { %250 = vsyncadd [#allocation3], 4294967168 }
  0x25   :  { %251 = dma.done.wait [#allocation6], 512  }
  0x26   :  { %252 = vsyncadd [#allocation6], 4294966784  ;;  %v259_v0 = vmov 0.0|0.0   ;;  %vm260_vm0 = vmmov 0   ;;  %v261_v1 = vmov 0.0   ;;  %vm43_vm1 = vcmask 261120  }
  0x27   :  { %167 = vmatprep.subr.bf16.mxu0 %v259_v0  ;;  %164 = vmatprep.mubr.msk.f32.mxu0 %vm260_vm0, %v261_v1  ;;  %v39_v2 = vld [vmem:[#allocation5] sm:$0xff]  ;;  %v40_v3 = vld [vmem:[#allocation5 + $0x8] sm:$0xff]  ;;  %vm169_vm2 = vmpackc.low %vm43_vm1, %vm43_vm1  ;;  %s262_s1 = smov [#allocation7]  }
  0x28   :  { %v168_v4 = vpack.c.bf16 %v40_v3, %v39_v2  ;;  %v41_v5 = vld [vmem:[#allocation5 + $0x10] sm:$0xff]  ;;  %v42_v6 = vld [vmem:[#allocation5 + $0x18] sm:$0xff]  ;;  %s136_s6 = sshll.u32 %s262_s1, 4  ;;  %s137_s6 = int_to_ptr.vmem [resolvable:$true] %s136_s6 }
  0x29   :  { %v172_v7 = vpack.c.bf16 %v42_v6, %v41_v5  ;;  %v38_v8 = vld [vmem:[#allocation2] sm:$0xff]  ;;  %s227_s7 = scalar_lea.vmem %s137_s6, 128  ;;  %p232_p3 = scmp.lt.s32.totalorder %s137_s6, %s137_s6 }
  0x2a   :  { %170 = vmatpush3.bf16.xpose.msk.msra.mxu0 %vm169_vm2, %v168_v4  ;;  %p228_p2 = scmp.ne.s32.totalorder %s137_s6, %s227_s7  ;;  %p233_p4 = scmp.lt.s32.totalorder %s227_s7, %s227_s7 }
  0x2b   :  { %171 = vmatprep.subr.bf16.mxu0 %v259_v0 }
  0x2c   :  { %p234_p5 = por %p233_p4, %p232_p3 }
  0x2e   :  { %p235_p6 = pnand %p234_p5, %p228_p2 }
  0x32   :  { %174 = vmatpush3.bf16.xpose.msk.msra.mxu0 %vm169_vm2, %v172_v7 }
  0x39   :  { %165 = vmatmul.mubr.msk.f32.vlgmr.msra.gmra.mrb[0].mxu0 %vm43_vm1, %v38_v8 }
 0x10c   :  { %v125_v9 = vpop.f32.mrb[0].mxu0 }
 0x10d   :  { %129 = vst.msk [vmem:[#allocation7] sm:$0xff] %vm43_vm1, %v125_v9  ;;  %v166_v10 = vpop.f32.mrb[1].mxu0 }
 0x10e   :  { %238 = shalt.err (!%p235_p6)
}
 0x10f   :  { %s239_s10 = scalar_lea.hbm %s327_s2, 128 }
 0x110   :  { %p240_p7 = scmp.ne.s32.totalorder %s327_s2, %s239_s10  ;;  %p243_p8 = scmp.lt.u32.totalorder %s239_s10, %s327_s2 }
 0x112   :  { %p245_p9 = pnand %p243_p8, %p240_p7 }
 0x114   :  { %248 = shalt.err (!%p245_p9)
}
 0x115   :  { %139 = dma.vmem_to_hbm [thread:$0]  %s137_s6, 128, %s327_s2, [#allocation4]  }
 0x116   :  { %253 = dma.done.wait [#allocation4], 128  }
 0x117   :  { %254 = vsyncadd [#allocation4], 4294967168 }
 0x118   :  { %143 = vsyncpa [#allocation3], 1 }
 0x119   :  { %144 = vsyncpa [#allocation6], 1 }
 0x11a   :  { %145 = vsyncpa [#allocation4], 1 }

</bundles_post_ra>
